<compile_context>
chip_gen: v7x
topology: tpu7x:2x2x1
jax: 0.10.0
libtpu: 0.0.40
codegen_flags: <defaults>
</compile_context>

<pallas_src>
import math
import numpy as np
import jax
import jax.numpy as jnp
from jax.experimental import pallas as pl
from jax.experimental.pallas import tpu as pltpu


# ---------------------------------------------------------------------------
# Parameter setup (plain numpy glue: equivalent of IsoSHConv.construct_filter)
# ---------------------------------------------------------------------------
def construct_filter(polar_filter, full_basis, sh_degree):
    """polar_filter: [in_channel, S, L] -> expanded filter [in_channel, S, C]."""
    polar_filter = np.asarray(polar_filter, dtype=np.float32)
    in_ch, S, L = polar_filter.shape
    scale = np.array(
        [math.sqrt(4.0 * math.pi / (4 * l + 1)) for l in range(L)],
        dtype=np.float32,
    )[None, None, :]
    f = polar_filter * scale
    repeat = np.array([4 * l + 1 for l in range(L)], dtype=np.int64)
    f = np.repeat(f, repeat, axis=2)  # [in_ch, S, sum(4l+1)]

    if full_basis:
        number = int((sh_degree + 1) * (sh_degree + 1))
        n_range = np.arange(0, sh_degree + 1, dtype=int)
    else:
        number = int((sh_degree + 1) * ((sh_degree + 2) / 2))
        n_range = np.arange(0, sh_degree + 1, 2, dtype=int)
    n_list = np.repeat(n_range, n_range * 2 + 1)
    even_indices = np.where(n_list % 2 == 0)[0]

    filter_full = np.zeros((in_ch, S, number), dtype=np.float32)
    filter_full[..., even_indices] = f
    # (PyTorch keeps an extra leading broadcast dim [1, in_ch, S, C]; we drop
    #  it since broadcasting handles it.)
    return jnp.asarray(filter_full)  # [in_ch, S, C]


# ---------------------------------------------------------------------------
# Pallas kernel: one grid step = all S shells for one (b, in_ch, V-tile).
#   out[b, c, :, :, v_tile] = filter[c, :, :, None] * x[b, c, None, :, v_tile]
# ---------------------------------------------------------------------------
def iso_sh_conv_kernel(x_ref, f_ref, o_ref):
    # x_ref: (1, 1, C, TV), f_ref: (1, S, C), o_ref: (1, 1, S, C, TV)
    x = x_ref[0, 0]                               # (C, TV)   lane-dense tile
    f = f_ref[0]                                  # (S, C)    expanded filter
    o_ref[0, 0] = f[:, :, None] * x[None, :, :]   # (S, C, TV)


def _choose_tv(V, C, S, itemsize, max_tv):
    """Lane-tile size: multiple of 128, <= V, <= max_tv, and small enough that
    the double-buffered (input + output) blocks stay under ~8 MiB of VMEM."""
    if V < 128:
        return V  # last dim equals the full array dim -> allowed as-is
    budget = 8 * 1024 * 1024
    per_v = 2 * (C + S * C) * itemsize            # 2x for double buffering
    tv_budget = max(128, (budget // per_v) // 128 * 128)
    return int(max(128, min(max_tv, tv_budget, (V // 128) * 128)))


def iso_sh_conv(x, filter_full, *, max_tv=8192):
    """x: [B, in_ch, C, X, Y, Z], filter_full: [in_ch, S, C]
       returns [B, in_ch, S, C, X, Y, Z]."""
    B, in_ch, C, X, Y, Z = x.shape
    S = filter_full.shape[1]
    V = X * Y * Z
    itemsize = jnp.dtype(x.dtype).itemsize

    TV = _choose_tv(V, C, S, itemsize, max_tv)
    n_vt = pl.cdiv(V, TV)  # partial boundary tile is masked by Pallas

    x2 = x.reshape(B, in_ch, C, V)         # metadata-only reshape (contiguous)
    f3 = filter_full.astype(x.dtype)       # [in_ch, S, C]

    out = pl.pallas_call(
        iso_sh_conv_kernel,
        out_shape=jax.ShapeDtypeStruct((B, in_ch, S, C, V), x.dtype),
        grid_spec=pltpu.PrefetchScalarGridSpec(
            num_scalar_prefetch=0,
            grid=(B, in_ch, n_vt),
            in_specs=[
                # Signal tile: streams over the V axis (fastest grid axis).
                pl.BlockSpec((1, 1, C, TV), lambda b, c, v: (b, c, 0, v)),
                # Whole (S, C) filter slice, keyed only on the in_channel grid
                # axis, so it is re-DMA'd only when in_channel changes.
                pl.BlockSpec((1, S, C), lambda b, c, v: (c, 0, 0)),
            ],
            # One lane-dense (S, C, TV) output slab per grid step.
            out_specs=pl.BlockSpec(
                (1, 1, S, C, TV), lambda b, c, v: (b, c, 0, 0, v)
            ),
        ),
        compiler_params=pltpu.CompilerParams(
            # All axes independent -> megacore chips can shard the grid.
            dimension_semantics=("parallel", "parallel", "parallel"),
            # Above the 16 MiB v5e scoped default; working set is <= ~8 MiB.
            vmem_limit_bytes=32 * 1024 * 1024,
        ),
    )(x2, f3)

    return out.reshape(B, in_ch, S, C, X, Y, Z)  # metadata-only reshape


# ---------------------------------------------------------------------------
# Main
# ---------------------------------------------------------------------------
if __name__ == "__main__":
    sh_degree = 4
    full_basis = False
    B = 2
    in_channel = 2
    S = 3                        # number of shells
    L = sh_degree // 2 + 1       # even SH orders (l = 0, 2, 4)
    C = int((sh_degree + 1) * ((sh_degree + 2) / 2))  # = 15 SH coefficients

    key = jax.random.PRNGKey(0)
    k_filt, k_x1, k_x2 = jax.random.split(key, 3)
    polar_filter = jax.random.normal(k_filt, (in_channel, S, L), dtype=jnp.float32)
    filter_full = construct_filter(polar_filter, full_basis, sh_degree)  # [in_ch, S, C]

    def reference(xx, filt):
        # Matches PyTorch broadcasting semantics.
        return xx[:, :, None] * filt[None, :, :, :, None, None, None]

    # Case 1: V = 6*6*6 = 216 (not a multiple of 128) -> exercises the masked
    # partial boundary tile (no explicit pad / slice copies).
    X = Y = Z = 6
    x1 = jax.random.normal(k_x1, (B, in_channel, C, X, Y, Z), dtype=jnp.float32)
    out1 = jax.block_until_ready(iso_sh_conv(x1, filter_full))
    ref1 = reference(x1, filter_full)
    assert out1.shape == (B, in_channel, S, C, X, Y, Z), out1.shape
    assert jnp.allclose(out1, ref1, rtol=1e-6, atol=1e-6), "mismatch vs reference (case 1)"

    # Case 2: V = 8*8*8 = 512 with TV capped at 256 -> exercises multiple V tiles.
    X = Y = Z = 8
    x2 = jax.random.normal(k_x2, (B, in_channel, C, X, Y, Z), dtype=jnp.float32)
    out2 = jax.block_until_ready(iso_sh_conv(x2, filter_full, max_tv=256))
    ref2 = reference(x2, filter_full)
    assert out2.shape == (B, in_channel, S, C, X, Y, Z), out2.shape
    assert jnp.allclose(out2, ref2, rtol=1e-6, atol=1e-6), "mismatch vs reference (case 2)"

    print("KERNEL_OK")
</pallas_src>

<mosaic_0001>
module attributes {stable_mosaic.version = 11 : i64} {
  func.func @iso_sh_conv_kernel(%arg0: i32, %arg1: i32, %arg2: i32, %arg3: memref<1x1x15x128xf32, #tpu.memory_space<vmem>>, %arg4: memref<1x3x15xf32, #tpu.memory_space<vmem>>, %arg5: memref<1x1x3x15x128xf32, #tpu.memory_space<vmem>>) attributes {dimension_semantics = [#tpu.dimension_semantics<parallel>, #tpu.dimension_semantics<parallel>, #tpu.dimension_semantics<parallel>], iteration_bounds = array<i64: 2, 2, 2>, scalar_prefetch = 0 : i64, scratch_operands = 0 : i64, tpu.core_type = #tpu.core_type<tc>, window_params = [{transform_indices = @transform_0, window_bounds = array<i64: 1, 1, 15, 128>}, {transform_indices = @transform_1, window_bounds = array<i64: 1, 3, 15>}, {transform_indices = @transform_2, window_bounds = array<i64: 1, 1, 3, 15, 128>}]} {
    %c0 = arith.constant 0 : index
    %c0_0 = arith.constant 0 : index
    %c0_1 = arith.constant 0 : index
    %c0_2 = arith.constant 0 : index
    %0 = vector.load %arg3[%c0, %c0_0, %c0_1, %c0_2] : memref<1x1x15x128xf32, #tpu.memory_space<vmem>>, vector<1x1x15x128xf32>
    %1 = vector.shape_cast %0 : vector<1x1x15x128xf32> to vector<15x128xf32>
    %c0_3 = arith.constant 0 : index
    %c0_4 = arith.constant 0 : index
    %c0_5 = arith.constant 0 : index
    %2 = vector.load %arg4[%c0_3, %c0_4, %c0_5] : memref<1x3x15xf32, #tpu.memory_space<vmem>>, vector<1x3x15xf32>
    %3 = vector.shape_cast %2 : vector<1x3x15xf32> to vector<3x15xf32>
    %4 = vector.shape_cast %3 : vector<3x15xf32> to vector<3x15x1xf32>
    %5 = vector.shape_cast %1 : vector<15x128xf32> to vector<1x15x128xf32>
    %6 = vector.broadcast %4 : vector<3x15x1xf32> to vector<3x15x128xf32>
    %7 = vector.broadcast %5 : vector<1x15x128xf32> to vector<3x15x128xf32>
    %8 = arith.mulf %6, %7 : vector<3x15x128xf32>
    %c0_6 = arith.constant 0 : index
    %c0_7 = arith.constant 0 : index
    %c0_8 = arith.constant 0 : index
    %c0_9 = arith.constant 0 : index
    %c0_10 = arith.constant 0 : index
    %9 = vector.load %arg5[%c0_6, %c0_7, %c0_8, %c0_9, %c0_10] : memref<1x1x3x15x128xf32, #tpu.memory_space<vmem>>, vector<1x1x3x15x128xf32>
    %10 = vector.shape_cast %9 : vector<1x1x3x15x128xf32> to vector<3x15x128xf32>
    %11 = vector.shape_cast %8 : vector<3x15x128xf32> to vector<1x1x3x15x128xf32>
    tpu.vector_store %arg5[%c0_6, %c0_7, %c0_8, %c0_9, %c0_10], %11 {strides = array<i32>} : memref<1x1x3x15x128xf32, #tpu.memory_space<vmem>>, vector<1x1x3x15x128xf32>,
    return
  }
  func.func @transform_0(%arg0: i32, %arg1: i32, %arg2: i32) -> (i32, i32, i32, i32) {
    %c0_i32 = arith.constant 0 : i32
    %c0_i32_0 = arith.constant 0 : i32
    return %arg0, %arg1, %c0_i32, %arg2 : i32, i32, i32, i32
  }
  func.func @transform_1(%arg0: i32, %arg1: i32, %arg2: i32) -> (i32, i32, i32) {
    %c0_i32 = arith.constant 0 : i32
    %c0_i32_0 = arith.constant 0 : i32
    %c0_i32_1 = arith.constant 0 : i32
    return %arg1, %c0_i32, %c0_i32_0 : i32, i32, i32
  }
  func.func @transform_2(%arg0: i32, %arg1: i32, %arg2: i32) -> (i32, i32, i32, i32, i32) {
    %c0_i32 = arith.constant 0 : i32
    %c0_i32_0 = arith.constant 0 : i32
    %c0_i32_1 = arith.constant 0 : i32
    return %arg0, %arg1, %c0_i32, %c0_i32_0, %arg2 : i32, i32, i32, i32, i32
  }
}

</mosaic_0001>

<bundles_post_ra>
// kernel: tpu_custom_call.1
= control target key start
LH: loop header
LB: loop body
LE: loop exit
PB: predicated region body
PF: predicated region fallthrough
CT: control target
= control target key end

     0   :  { %s607_s9 = smov 0   ;;  %s609_s10 = smov 0   ;;  %s738_s0 = inlined_call_operand.vmem [shape: f32[2,2,15,216], index: 0, kind: input, shape index: {}]   ;;  %s739_s1 = inlined_call_operand.vmem [shape: f32[2,3,15], index: 1, kind: input, shape index: {}]   ;;  %s740_s2 = inlined_call_operand.vmem [shape: f32[2,2,3,15,216], index: 2, kind: output, shape index: {}]  }
   0x1   :  { %s611_s11 = smov 0   ;;  %s613_s12 = smov 0  }
   0x2   :  { %s615_s13 = smov 0   ;;  %s617_s14 = smov 0  }
   0x3   :  { %s619_s15 = smov 0   ;;  %s621_s16 = smov 0  }
   0x4   :  { %s623_s17 = smov 0  }
   0x5 LB: > { %s24_s18 = sadd.s32 1, %s578_s14  ;;  %s27_s19 = sadd.s32 1, %s582_s15  ;;  %s590_s17 = sphi %s623_s17, %s12_s17   ;;  %s586_s16 = sphi %s621_s16, %s750_s16   ;;  %s582_s15 = sphi %s619_s15, %s749_s15   ;;  %s578_s14 = sphi %s617_s14, %s748_s14   ;;  %s574_s13 = sphi %s615_s13, %s747_s13   ;;  %s570_s12 = sphi %s613_s12, %s746_s12   ;;  %s566_s11 = sphi %s611_s11, %s745_s11   ;;  %s562_s10 = sphi %s609_s10, %s744_s10   ;;  %s558_s9 = sphi %s607_s9, %s743_s9  }
   0x6   : > { %p25_p0 = scmp.ge.s32.totalorder %s24_s18, 2  ;;  %s431_s20 = sadd.s32 4294967295, %s590_s17  }
   0x7   : > { %s31_s21 = sadd.s32 1, %s586_s16  ;;  %p49_p1 = scmp.ne.s32.totalorder %s562_s10, %s558_s9 }
   0x8   : > { %s752_s18 = smov (%p25_p0, %s24_s18), 0  ;;  %s754_s19 = smov (!%p25_p0, %s27_s19), %s582_s15 }
   0x9   : > { %p29_p2 = scmp.ge.s32.totalorder %s754_s19, 2  ;;  %p50_p3 = scmp.eq.s32.totalorder %s590_s17, 0 }
   0xa   : > { %p109_p4 = scmp.eq.s32.totalorder %s431_s20, 7  ;;  %s38_s25 = ssub.s32 %s578_s14, %s752_s18 }
   0xb   : > { %s756_s19 = smov (%p29_p2, %s754_s19), 0  ;;  %s758_s21 = smov (!%p29_p2, %s31_s21), %s586_s16 }
   0xc   : > { %p665_p5 = por %p50_p3, %p49_p1  ;;  %p33_p6 = scmp.ge.s32.totalorder %s758_s21, 2 }
   0xd   : > { %p669_p7 = por %p109_p4, %p49_p1  ;;  %s36_s24 = ssub.s32 %s582_s15, %s756_s19 }
   0xe   : > { %s760_s21 = smov (%p33_p6, %s758_s21), 0  ;;  %s42_s29 = sadd.s32 1, %s562_s10 }
   0xf   : > { %s35_s26 = ssub.s32 %s586_s16, %s760_s21  ;;  %p434_p9 = scmp.ge.s32.totalorder %s590_s17, 8 }
  0x10   : > { %s37_s27 = sor.u32 %s36_s24, %s35_s26 }
  0x11   : > { %s39_s28 = sor.u32 %s38_s25, %s37_s27  ;;  %131 = sbr.rel (%p434_p9) target bundleno = 32 (0x20), region = 16 }
  0x12   : > { %p40_p8 = scmp.eq.s32.totalorder %s39_s28, 0 }
  0x14   : > { %s683_s30 = scalar_select %p40_p8, %s562_s10, %s42_s29  }
  0x18   : > { %134 = sbr.rel (!%p665_p5) target bundleno = 32 (0x20), region = 20  ;;  %s136_s3 = sand.u32 (%p665_p5), 1, %s562_s10  }
  0x19   : > { %s436_s4 = sshll.u32 (%p665_p5), %s582_s15, 2  ;;  %s435_s5 = sshll.u32 (%p665_p5), %s136_s3, 4 }
  0x1a   : > { %s140_s6 = sadd.s32 (%p665_p5), %s578_s14, %s436_s4  ;;  %s437_s7 = sshll.u32 (%p665_p5), %s586_s16, 3 }
  0x1b   : > { %s142_s8 = sadd.s32 (%p665_p5), %s437_s7, %s140_s6  ;;  %s138_s27 = scalar_lea.vmem (%p665_p5), [#allocation2], %s435_s5 }
  0x1c   : > { %s438_s20 = sshll.u32 (%p665_p5), %s142_s8, 3 }
  0x1d   : > { %s144_s26 = scalar_lea.vmem (%p665_p5), %s738_s0, %s438_s20 }
  0x1e   : > { %v174_v0 = vld [vmem:[%s144_s26] sm:$0xff] (%p665_p5)  ;;  %v176_v1 = vld [vmem:[%s144_s26 + $0x10] sm:$0xff] (%p665_p5) }
  0x1f   : > { %175 = vst [vmem:[%s138_s27] sm:$0xff] %v174_v0  ;;  %177 = vst [vmem:[%s138_s27 + $0x8] sm:$0xff] %v176_v1 }
  0x20 PF: > { %p439_p10 = scmp.ge.s32.totalorder %s590_s17, 1  ;;  %p189_p11 = scmp.lt.s32.totalorder %s590_s17, 9 }
  0x22   : > { %p190_p12 = pnand %p439_p10, %p189_p11 }
  0x23   : > { %p220_p13 = scmp.lt.s32.totalorder (!%p190_p12), %s570_s12, 1  ;;  %v227_v2 = vlaneseq (!%p190_p12)  ;;  %s196_s5 = sand.u32 (!%p190_p12), 1, %s558_s9  }
  0x24   : > { %193 = sbr.rel (%p190_p12) target bundleno = 184 (0xb8), region = 62  ;;  %s440_s6 = sshll.u32 (!%p190_p12), %s196_s5, 4 }
  0x25   : > { %v228_v3 = vshrl.u32 (!%p190_p12), %v227_v2, 7  ;;  %s445_s7 = smul.u32 (!%p190_p12), 48, %s196_s5  ;;  %s198_s8 = scalar_lea.vmem (!%p190_p12), [#allocation2], %s440_s6 }
  0x26   : > { %v224_v11 = vld [vmem:[%s198_s8] sm:$0xff] (!%p190_p12)  ;;  %v225_v16 = vld [vmem:[%s198_s8 + $0x8] sm:$0x7f] (!%p190_p12) }
  0x27   : > { %v240_v4 = vsub.s32 (!%p190_p12), 1, %v228_v3  ;;  %v229_v5 = vsub.s32 (!%p190_p12), 0, %v228_v3  ;;  %v251_v9 = vsub.s32 (!%p190_p12), 2, %v228_v3  ;;  %s219_s20 = scalar_lea.vmem (!%p190_p12), [#allocation3], %s445_s7 }
  0x2b   : > { %s221_s22 = scalar_select %p220_p13, %s570_s12, 1 }
  0x2c   : > { %s446_s9 = smul.u32 (%p669_p7), 12, %s570_s12 }
  0x2d   : > { %s441_s28 = sshll.u32 %s221_s22, 2  ;;  %s447_s24 = smul.u32 (%p669_p7), 24, %s574_s13 }
  0x2e   : > { %s223_s4 = scalar_lea.vmem %s739_s1, %s441_s28  ;;  %s280_s25 = sadd.s32 (%p669_p7), %s566_s11, %s446_s9 }
  0x2f   : > { %v226_v6 = vld [vmem:[%s223_s4] sm:$0x7]  ;;  %s282_s26 = sadd.s32 (%p669_p7), %s447_s24, %s280_s25 }
  0x30   : > { %v241_v7 = vrot.slane %v226_v6, %v240_v4  ;;  %v230_v8 = vrot.slane %v226_v6, %v229_v5  ;;  %v252_v10 = vrot.slane %v226_v6, %v251_v9  ;;  %s442_s27 = sshll.u32 (%p669_p7), %s282_s26, 3 }
  0x31   : > { %s284_s29 = scalar_lea.vmem (%p669_p7), %s740_s2, %s442_s27 }
  0x32   : > { %243 = vbcast.lane.b32.xlu1 %v241_v7, 256  ;;  %232 = vbcast.lane.b32.xlu0 %v230_v8, 256 }
  0x36   : > { %247 = vbcast.lane.b32.xlu1 %v241_v7, 264  ;;  %236 = vbcast.lane.b32.xlu0 %v230_v8, 264 }
  0x3a   : > { %258 = vbcast.lane.b32.xlu1 %v252_v10, 264  ;;  %254 = vbcast.lane.b32.xlu0 %v252_v10, 256 }
  0xa4   : > { %v244_v12 = vpop.permute.xlu1 %243  ;;  %v233_v13 = vpop.permute.xlu0 %232 }
  0xa5   : > { %v262_v14 = vmul.f32 %v244_v12, %v224_v11  ;;  %v260_v15 = vmul.f32 %v233_v13, %v224_v11 }
  0xa7   : > { %268 = vst [vmem:[%s219_s20 + $0x10] sm:$0xff] %v262_v14  ;;  %266 = vst [vmem:[%s219_s20] sm:$0xff] %v260_v15 }
  0xa8   : > { %v248_v17 = vpop.permute.xlu1 %247  ;;  %v237_v18 = vpop.permute.xlu0 %236 }
  0xa9   : > { %v263_v19 = vmul.f32 %v248_v17, %v225_v16  ;;  %v261_v20 = vmul.f32 %v237_v18, %v225_v16  ;;  %278 = sbr.rel (!%p669_p7) target bundleno = 184 (0xb8), region = 70 }
  0xab   : > { %269 = vst [vmem:[%s219_s20 + $0x18] sm:$0x7f] %v263_v19  ;;  %267 = vst [vmem:[%s219_s20 + $0x8] sm:$0x7f] %v261_v20 }
  0xac   : > { %v259_v21 = vpop.permute.xlu1 %258  ;;  %v255_v22 = vpop.permute.xlu0 %254 }
  0xad   : > { %v265_v23 = vmul.f32 %v259_v21, %v225_v16  ;;  %v264_v24 = vmul.f32 %v255_v22, %v224_v11 }
  0xae   : > { %v322_v25 = vld [vmem:[%s219_s20] sm:$0xff] (%p669_p7)  ;;  %v326_v27 = vld [vmem:[%s219_s20 + $0x10] sm:$0xff] (%p669_p7) }
  0xaf   : > { %271 = vst [vmem:[%s219_s20 + $0x28] sm:$0x7f] %v265_v23  ;;  %270 = vst [vmem:[%s219_s20 + $0x20] sm:$0xff] %v264_v24 }
  0xb0   : > { %323 = vst [vmem:[%s284_s29] sm:$0xff] %v322_v25  ;;  %327 = vst [vmem:[%s284_s29 + $0x20] sm:$0xff] %v326_v27 }
  0xb2   : > { %v324_v26 = vld [vmem:[%s219_s20 + $0x8] sm:$0xff]  ;;  %v328_v28 = vld [vmem:[%s219_s20 + $0x18] sm:$0xff] }
  0xb3   : > { %325 = vst [vmem:[%s284_s29 + $0x10] sm:$0xff] %v324_v26  ;;  %329 = vst [vmem:[%s284_s29 + $0x30] sm:$0xff] %v328_v28 }
  0xb6   : > { %v330_v29 = vld [vmem:[%s219_s20 + $0x20] sm:$0xff]  ;;  %v332_v30 = vld [vmem:[%s219_s20 + $0x28] sm:$0xff] }
  0xb7   : > { %331 = vst [vmem:[%s284_s29 + $0x40] sm:$0xff] %v330_v29  ;;  %333 = vst [vmem:[%s284_s29 + $0x50] sm:$0xff] %v332_v30 }
  0xb8 PF: > { %s12_s17 = sadd.s32 1, %s590_s17   ;;  %s743_s9 = smov %s562_s10 }
  0xb9   : > { %p9_p0 = scmp.ge.s32.totalorder %s12_s17, 10   ;;  %s744_s10 = smov %s683_s30 }
  0xba   : > { %s745_s11 = smov %s578_s14  ;;  %s746_s12 = smov %s582_s15 }
  0xbb   : > { %s747_s13 = smov %s586_s16  ;;  %s748_s14 = smov %s752_s18 }
  0xbc   : > { %s749_s15 = smov %s756_s19  ;;  %s750_s16 = smov %s760_s21 }
  0xbd   :  { %11 = sbr.rel (!%p9_p0) target bundleno = 5 (0x5), region = 142 }

</bundles_post_ra>
